<compile_context>
chip_gen: v6e
topology: v6e:2x2x1
jax: 0.10.0
libtpu: 0.0.40
codegen_flags: <defaults>
</compile_context>

<pallas_src>
import jax
import jax.numpy as jnp
import numpy as np
from jax.experimental import pallas as pl
from jax.experimental.pallas import tpu as pltpu


def rgcn_kernel(x_ref, a_ref, wself_ref, wrel_ref, o_ref):
    # x_ref     : (bt, N, D)    bf16  VMEM
    # a_ref     : (bt, N, R*N)  int8  VMEM   columns ordered k = r*N + src
    # wself_ref : (D, D)        bf16  VMEM
    # wrel_ref  : (R, D, D)     bf16  VMEM
    # o_ref     : (bt, N, D)    f32   VMEM
    bt, n, d = x_ref.shape
    r_count = wrel_ref.shape[0]

    # Fold the batch block into the MXU M dimension (leading-dim reshape only).
    x2d = x_ref[...].reshape(bt * n, d)                                     # bf16

    # Self transform: one fat bf16 matmul with f32 accumulation.
    self_x = jnp.dot(x2d, wself_ref[...],
                     preferred_element_type=jnp.float32)                    # (bt*N, D) f32

    # Relation projections emitted directly in (relation, src, D) order, so the
    # stacked aggregation operand needs no minor-dim relayout:
    #   p_stack[b, r*N + m, :] = x[b, m, :] @ W_r
    # (R is a small static constant; the loop unrolls at trace time.)
    parts = [
        jnp.dot(x2d, wrel_ref[rr],
                preferred_element_type=jnp.float32).reshape(bt, n, d)
        for rr in range(r_count)
    ]
    p_stack = jnp.concatenate(parts, axis=1).astype(jnp.bfloat16)           # (bt, R*N, D)

    # 0/1 int8 adjacency -> bf16 right before the MXU (exact values).
    a = a_ref[...].astype(jnp.bfloat16)                                     # (bt, N, R*N)

    # Single fused neighbour aggregation per batch block: K = R*N.
    neigh = jnp.einsum("bnk,bkd->bnd", a, p_stack,
                       preferred_element_type=jnp.float32)                  # (bt, N, D) f32

    # Degree normalisation: exact f32-accumulated count of (relation, src) edges.
    norm = jnp.sum(a, axis=-1, keepdims=True, dtype=jnp.float32)            # (bt, N, 1)
    inv_norm = pl.reciprocal(jnp.maximum(norm, 1.0), approx=False)          # exact; EUP slot

    out = self_x.reshape(bt, n, d) + neigh * inv_norm
    # TODO(synk): dropout is identity here (inference / eval mode); training-mode
    # dropout would need pltpu.prng_seed + pltpu.prng_random_bits with a seed input.
    o_ref[...] = jnp.maximum(out, 0.0).astype(o_ref.dtype)


def rgcn_layer(x, matrix, w_self, w_rel, *, batch_block=None, vmem_limit_bytes=None):
    B, N, D = x.shape
    R = matrix.shape[1]
    assert matrix.shape == (B, R, N, N)

    if batch_block is None:
        # Aim for >= 4 grid steps when possible: pipelining depth on 1-TC chips
        # (v5e/v6e) and >= 2 "parallel" steps for megacore sharding on v7x.
        batch_block = max(1, B // min(B, 4))
    while B % batch_block:
        batch_block -= 1
    bt = batch_block

    if vmem_limit_bytes is None:
        # Per-generation VMEM budget: ~3/4 of physical, clamped to [32, 100] MiB
        # (v5e/v6e: 128 MiB -> 96 MiB; v7x: 64 MiB -> 48 MiB).
        try:
            cap = pltpu.get_tpu_info().vmem_capacity_bytes
            vmem_limit_bytes = int(min(100 * 2**20, max(32 * 2**20, cap * 3 // 4)))
        except Exception:  # pragma: no cover - conservative fallback
            vmem_limit_bytes = 64 * 2**20

    # Stage inputs in TPU-friendly dtypes / layouts (one-time XLA-side prep):
    #  * x / weights in bf16 -> full-rate MXU, f32 accumulation in-kernel.
    #  * adjacency in int8 (0/1 exact) -> 4x less HBM traffic on the dominant
    #    O(B*R*N^2) stream; upcast to bf16 inside the kernel.
    #  * adjacency flattened to (B, N, R*N) with columns k = r*N + src, matching
    #    the in-kernel (relation, src, D) projection stacking -> one K=R*N matmul.
    x_bf16 = x.astype(jnp.bfloat16)
    a_cat = jnp.transpose(matrix, (0, 2, 1, 3)).reshape(B, N, R * N).astype(jnp.int8)
    w_self_bf16 = w_self.astype(jnp.bfloat16)
    w_rel_bf16 = w_rel.astype(jnp.bfloat16)

    flops = 2 * B * N * D * D * (1 + R) + 2 * B * N * (R * N) * D
    bytes_accessed = (B * N * D * 2) + (B * N * R * N) + ((1 + R) * D * D * 2) + (B * N * D * 4)

    return pl.pallas_call(
        rgcn_kernel,
        out_shape=jax.ShapeDtypeStruct((B, N, D), x.dtype),
        grid_spec=pltpu.PrefetchScalarGridSpec(
            num_scalar_prefetch=0,
            grid=(B // bt,),
            in_specs=[
                pl.BlockSpec((bt, N, D), lambda b: (b, 0, 0)),
                pl.BlockSpec((bt, N, R * N), lambda b: (b, 0, 0)),
                # Weights: constant index_map, resident every step (tiny here).
                pl.BlockSpec((D, D), lambda b: (0, 0)),
                pl.BlockSpec((R, D, D), lambda b: (0, 0, 0)),
            ],
            out_specs=pl.BlockSpec((bt, N, D), lambda b: (b, 0, 0)),
        ),
        compiler_params=pltpu.CompilerParams(
            dimension_semantics=("parallel",),
            vmem_limit_bytes=vmem_limit_bytes,
        ),
        cost_estimate=pl.CostEstimate(flops=flops, transcendentals=0,
                                      bytes_accessed=bytes_accessed),
    )(x_bf16, a_cat, w_self_bf16, w_rel_bf16)


def rgcn_reference(x, matrix, w_self, w_rel):
    # Pure-JAX f32 reference mirroring the PyTorch forward (eval mode).
    self_x = x @ w_self                                      # (B, N, D)
    prog = jnp.einsum("bnd,rde->brne", x, w_rel)             # (B, R, N, D)
    neigh = jnp.einsum("brnm,brmd->bnd", matrix, prog)       # sum over relations
    norm = matrix.sum(axis=1).sum(axis=-1, keepdims=True)    # (B, N, 1)
    norm = jnp.maximum(norm, 1.0)
    return jnp.maximum(self_x + neigh / norm, 0.0)


if __name__ == "__main__":
    # Toy config: d_model = 128 (multiple of 128 -> naturally lane-dense loads
    # and stores), num_relation = 3, dropout inactive (eval mode).
    B, N, D, R = 4, 8, 128, 3

    key = jax.random.PRNGKey(0)
    k_x, k_m, k_ws, k_wr = jax.random.split(key, 4)

    x = jax.random.normal(k_x, (B, N, D), dtype=jnp.float32)
    # binary per-relation adjacency
    matrix = (jax.random.uniform(k_m, (B, R, N, N)) > 0.5).astype(jnp.float32)

    # nn.Linear(D, D, bias=False) weights, stored pre-transposed (applied as x @ W)
    bound = 1.0 / np.sqrt(D)
    w_self = jax.random.uniform(k_ws, (D, D), jnp.float32, -bound, bound)
    w_rel = jax.random.uniform(k_wr, (R, D, D), jnp.float32, -bound, bound)

    out = rgcn_layer(x, matrix, w_self, w_rel)
    out = jax.block_until_ready(out)

    ref = rgcn_reference(x, matrix, w_self, w_rel)
    # bf16 operands on the MXU paths -> relaxed tolerance.
    np.testing.assert_allclose(np.asarray(out), np.asarray(ref), rtol=2e-2, atol=2e-2)

    print("KERNEL_OK")
</pallas_src>

<mosaic_0001>
module attributes {stable_mosaic.version = 11 : i64} {
  func.func @rgcn_kernel(%arg0: i32, %arg1: memref<1x8x128xbf16, #tpu.memory_space<vmem>>, %arg2: memref<1x8x24xi8, #tpu.memory_space<vmem>>, %arg3: memref<128x128xbf16, #tpu.memory_space<vmem>>, %arg4: memref<3x128x128xbf16, #tpu.memory_space<vmem>>, %arg5: memref<1x8x128xf32, #tpu.memory_space<vmem>>) attributes {dimension_semantics = [#tpu.dimension_semantics<parallel>], iteration_bounds = array<i64: 4>, scalar_prefetch = 0 : i64, scratch_operands = 0 : i64, tpu.core_type = #tpu.core_type<tc>, window_params = [{transform_indices = @transform_0, window_bounds = array<i64: 1, 8, 128>}, {transform_indices = @transform_1, window_bounds = array<i64: 1, 8, 24>}, {pipeline_mode = #tpu.pipeline_mode<synchronous>, transform_indices = @transform_2, window_bounds = array<i64: 128, 128>}, {pipeline_mode = #tpu.pipeline_mode<synchronous>, transform_indices = @transform_3, window_bounds = array<i64: 3, 128, 128>}, {transform_indices = @transform_4, window_bounds = array<i64: 1, 8, 128>}]} {
    %c0 = arith.constant 0 : index
    %c0_0 = arith.constant 0 : index
    %c0_1 = arith.constant 0 : index
    %0 = vector.load %arg1[%c0, %c0_0, %c0_1] : memref<1x8x128xbf16, #tpu.memory_space<vmem>>, vector<1x8x128xbf16>
    %1 = vector.shape_cast %0 : vector<1x8x128xbf16> to vector<8x128xbf16>
    %c0_2 = arith.constant 0 : index
    %c0_3 = arith.constant 0 : index
    %2 = vector.load %arg3[%c0_2, %c0_3] : memref<128x128xbf16, #tpu.memory_space<vmem>>, vector<128x128xbf16>
    %cst = arith.constant dense<0.000000e+00> : vector<8x128xf32>
    %3 = tpu.matmul %1, %2, %cst {dimension_numbers = #tpu.dot_dimension_numbers<[1], [0], [0], [1], [0, 0, 1, 1], [], []>} : vector<8x128xbf16>, vector<128x128xbf16>, vector<8x128xf32> -> vector<8x128xf32>
    %c0_4 = arith.constant 0 : index
    %c0_5 = arith.constant 0 : index
    %c0_6 = arith.constant 0 : index
    %4 = vector.load %arg4[%c0_4, %c0_5, %c0_6] : memref<3x128x128xbf16, #tpu.memory_space<vmem>>, vector<1x128x128xbf16>
    %5 = vector.shape_cast %4 : vector<1x128x128xbf16> to vector<128x128xbf16>
    %cst_7 = arith.constant dense<0.000000e+00> : vector<8x128xf32>
    %6 = tpu.matmul %1, %5, %cst_7 {dimension_numbers = #tpu.dot_dimension_numbers<[1], [0], [0], [1], [0, 0, 1, 1], [], []>} : vector<8x128xbf16>, vector<128x128xbf16>, vector<8x128xf32> -> vector<8x128xf32>
    %7 = vector.shape_cast %6 : vector<8x128xf32> to vector<1x8x128xf32>
    %c1 = arith.constant 1 : index
    %c0_8 = arith.constant 0 : index
    %c0_9 = arith.constant 0 : index
    %8 = vector.load %arg4[%c1, %c0_8, %c0_9] : memref<3x128x128xbf16, #tpu.memory_space<vmem>>, vector<1x128x128xbf16>
    %9 = vector.shape_cast %8 : vector<1x128x128xbf16> to vector<128x128xbf16>
    %cst_10 = arith.constant dense<0.000000e+00> : vector<8x128xf32>
    %10 = tpu.matmul %1, %9, %cst_10 {dimension_numbers = #tpu.dot_dimension_numbers<[1], [0], [0], [1], [0, 0, 1, 1], [], []>} : vector<8x128xbf16>, vector<128x128xbf16>, vector<8x128xf32> -> vector<8x128xf32>
    %11 = vector.shape_cast %10 : vector<8x128xf32> to vector<1x8x128xf32>
    %c2 = arith.constant 2 : index
    %c0_11 = arith.constant 0 : index
    %c0_12 = arith.constant 0 : index
    %12 = vector.load %arg4[%c2, %c0_11, %c0_12] : memref<3x128x128xbf16, #tpu.memory_space<vmem>>, vector<1x128x128xbf16>
    %13 = vector.shape_cast %12 : vector<1x128x128xbf16> to vector<128x128xbf16>
    %cst_13 = arith.constant dense<0.000000e+00> : vector<8x128xf32>
    %14 = tpu.matmul %1, %13, %cst_13 {dimension_numbers = #tpu.dot_dimension_numbers<[1], [0], [0], [1], [0, 0, 1, 1], [], []>} : vector<8x128xbf16>, vector<128x128xbf16>, vector<8x128xf32> -> vector<8x128xf32>
    %15 = vector.shape_cast %14 : vector<8x128xf32> to vector<1x8x128xf32>
    %16 = tpu.concatenate %7, %11, %15 in 1 : vector<1x8x128xf32>, vector<1x8x128xf32>, vector<1x8x128xf32> -> vector<1x24x128xf32>
    %17 = arith.truncf %16 : vector<1x24x128xf32> to vector<1x24x128xbf16>
    %c0_14 = arith.constant 0 : index
    %c0_15 = arith.constant 0 : index
    %c0_16 = arith.constant 0 : index
    %18 = vector.load %arg2[%c0_14, %c0_15, %c0_16] : memref<1x8x24xi8, #tpu.memory_space<vmem>>, vector<1x8x24xi8>
    %19 = arith.sitofp %18 : vector<1x8x24xi8> to vector<1x8x24xbf16>
    "tpu.trace_start"() <{level = 10 : i32, message = "bnk,bkd->bnd"}> : () -> ()
    %cst_17 = arith.constant dense<0.000000e+00> : vector<1x8x128xf32>
    %20 = tpu.matmul %19, %17, %cst_17 {dimension_numbers = #tpu.dot_dimension_numbers<[2], [1], [1], [2], [0, 0, 0, 1, 1, 2], [0], [0]>} : vector<1x8x24xbf16>, vector<1x24x128xbf16>, vector<1x8x128xf32> -> vector<1x8x128xf32>
    "tpu.trace_stop"() : () -> ()
    %21 = arith.extf %19 : vector<1x8x24xbf16> to vector<1x8x24xf32>
    %cst_18 = arith.constant dense<0.000000e+00> : vector<1x8xf32>
    %22 = vector.multi_reduction <add>, %21, %cst_18 [2] : vector<1x8x24xf32> to vector<1x8xf32>
    %23 = vector.shape_cast %22 : vector<1x8xf32> to vector<1x8x1xf32>
    %cst_19 = arith.constant 1.000000e+00 : f32
    %24 = vector.broadcast %cst_19 : f32 to vector<1x8x1xf32>
    %25 = arith.maximumf %23, %24 : vector<1x8x1xf32>
    %26 = tpu.reciprocal %25 : vector<1x8x1xf32> -> vector<1x8x1xf32>
    %27 = vector.shape_cast %3 : vector<8x128xf32> to vector<1x8x128xf32>
    %28 = vector.broadcast %26 : vector<1x8x1xf32> to vector<1x8x128xf32>
    %29 = arith.mulf %20, %28 : vector<1x8x128xf32>
    %30 = arith.addf %27, %29 : vector<1x8x128xf32>
    %cst_20 = arith.constant 0.000000e+00 : f32
    %31 = vector.broadcast %cst_20 : f32 to vector<1x8x128xf32>
    %32 = arith.maximumf %30, %31 : vector<1x8x128xf32>
    %c0_21 = arith.constant 0 : index
    %c0_22 = arith.constant 0 : index
    %c0_23 = arith.constant 0 : index
    %33 = vector.load %arg5[%c0_21, %c0_22, %c0_23] : memref<1x8x128xf32, #tpu.memory_space<vmem>>, vector<1x8x128xf32>
    tpu.vector_store %arg5[%c0_21, %c0_22, %c0_23], %32 {strides = array<i32>} : memref<1x8x128xf32, #tpu.memory_space<vmem>>, vector<1x8x128xf32>,
    return
  }
  func.func @transform_0(%arg0: i32) -> (i32, i32, i32) {
    %c0_i32 = arith.constant 0 : i32
    %c0_i32_0 = arith.constant 0 : i32
    %c0_i32_1 = arith.constant 0 : i32
    return %arg0, %c0_i32, %c0_i32_0 : i32, i32, i32
  }
  func.func @transform_1(%arg0: i32) -> (i32, i32, i32) {
    %c0_i32 = arith.constant 0 : i32
    %c0_i32_0 = arith.constant 0 : i32
    %c0_i32_1 = arith.constant 0 : i32
    return %arg0, %c0_i32, %c0_i32_0 : i32, i32, i32
  }
  func.func @transform_2(%arg0: i32) -> (i32, i32) {
    %c0_i32 = arith.constant 0 : i32
    %c0_i32_0 = arith.constant 0 : i32
    %c0_i32_1 = arith.constant 0 : i32
    return %c0_i32, %c0_i32_0 : i32, i32
  }
  func.func @transform_3(%arg0: i32) -> (i32, i32, i32) {
    %c0_i32 = arith.constant 0 : i32
    %c0_i32_0 = arith.constant 0 : i32
    %c0_i32_1 = arith.constant 0 : i32
    %c0_i32_2 = arith.constant 0 : i32
    return %c0_i32, %c0_i32_0, %c0_i32_1 : i32, i32, i32
  }
  func.func @transform_4(%arg0: i32) -> (i32, i32, i32) {
    %c0_i32 = arith.constant 0 : i32
    %c0_i32_0 = arith.constant 0 : i32
    %c0_i32_1 = arith.constant 0 : i32
    return %arg0, %c0_i32, %c0_i32_0 : i32, i32, i32
  }
}

</mosaic_0001>

<bundles_post_ra>
// kernel: tpu_custom_call.1
= control target key start
LH: loop header
LB: loop body
LE: loop exit
PB: predicated region body
PF: predicated region fallthrough
CT: control target
= control target key end

     0   :  { %9 = vsyncpa [#allocation3], 0  ;;  %s1674_s0 = inlined_call_operand.hbm [shape: bf16[4,8,128], index: 0, kind: input, shape index: {}]   ;;  %s1675_s1 = inlined_call_operand.hbm [shape: s8[4,8,24], index: 1, kind: input, shape index: {}]   ;;  %s1676_s2 = inlined_call_operand.hbm [shape: bf16[128,128], index: 2, kind: input, shape index: {}]   ;;  %s1677_s3 = inlined_call_operand.hbm [shape: bf16[3,128,128], index: 3, kind: input, shape index: {}]   ;;  %s1678_s4 = inlined_call_operand.hbm [shape: f32[4,8,128], index: 4, kind: output, shape index: {}]  }
   0x1   :  { %11 = vsyncpa [#allocation3 + $0x1], 0 }
   0x2   :  { %12 = vsyncpa [#allocation6], 0 }
   0x3   :  { %14 = vsyncpa [#allocation6 + $0x1], 0 }
   0x4   :  { %15 = vsyncpa [#allocation9], 0 }
   0x5   :  { %16 = vsyncpa [#allocation4], 0 }
   0x6   :  { %18 = vsyncpa [#allocation4 + $0x1], 0  ;;  %s1396_s15 = smov 0   ;;  %s1398_s16 = smov 0  }
   0x7   :  { %s1400_s17 = smov 0   ;;  %s1402_s18 = smov 0  }
   0x8 LB: > { %s1417_s19 = sadd.s32 4294967295, %s1360_s18   ;;  %s887_s20 = sadd.s32 4294967294, %s1360_s18   ;;  %s1360_s18 = sphi %s1402_s18, %s1701_s18   ;;  %s1356_s17 = sphi %s1400_s17, %s1700_s17   ;;  %s1352_s16 = sphi %s1398_s16, %s1699_s16   ;;  %s1348_s15 = sphi %s1396_s15, %s1698_s15  }
   0x9   : > { %p44_p0 = scmp.ne.s32.totalorder %s1352_s16, %s1348_s15  ;;  %p1679_p1 = scmp.eq.s32.totalorder %s1417_s19, 0 }
   0xa   : > { %p142_p3 = scmp.eq.s32.totalorder %s887_s20, 3  ;;  %p888_p5 = scmp.ge.s32.totalorder %s1360_s18, 1 }
   0xb   : > { %p1426_p4 = por %p1679_p1, %p44_p0  ;;  %p149_p7 = scmp.lt.s32.totalorder %s1360_s18, 5 }
   0xc   : > { %p1431_p6 = por %p142_p3, %p44_p0  ;;  %s1362_s24 = smov [#allocation7]  }
   0xd   : > { %s1683_s21 = scalar_select %p1426_p4, 1, 0 }
   0xe   : > { %s1684_s22 = scalar_select %p1431_p6, 1, 0 }
   0xf   : > { %p1436_p8 = pnand %p888_p5, %p149_p7  ;;  %s161_s25 = sshll.u32 %s1362_s24, 4  ;;  %s162_s25 = int_to_ptr.vmem [resolvable:$true] %s161_s25 }
  0x10   : > { %s1363_s27 = smov [#allocation8]   ;;  %s1187_s29 = scalar_lea.vmem %s162_s25, 1024 }
  0x11   : > { %s1685_s23 = scalar_select %p1436_p8, 1, 0 }
  0x12   : > { %p1080_p9 = pneg %p1436_p8  ;;  %s174_s28 = sshll.u32 %s1363_s27, 4  ;;  %s175_s28 = int_to_ptr.vmem [resolvable:$true] %s174_s28 }
  0x13   : > { %p1188_p12 = scmp.ne.s32.totalorder %s162_s25, %s1187_s29  ;;  %p1195_p3 = scmp.lt.s32.totalorder %s162_s25, %s162_s25 }
  0x14   : > { %p1444_p10 = pnand %p1080_p9, %p1679_p1  ;;  %p1196_p5 = scmp.lt.s32.totalorder %s1187_s29, %s1187_s29 }
  0x16   : > { %p1178_p11 = pneg %p1444_p10  ;;  %p1197_p7 = por %p1196_p5, %p1195_p3 }
  0x18   : > { %p1190_p13 = pnand %p1188_p12, %p1178_p11 }
  0x1a   : > { %p1191_p0 = pneg %p1190_p13 }
  0x1c   : > { %p1198_p9 = pnand %p1197_p7, %p1191_p0 }
  0x1e   : > { %1201 = shalt.err (!%p1198_p9)
}
  0x1f   : > { %s1364_s30 = smov 64   ;;  %s1365_s5 = smov 4  }
  0x20   : > { %1083 = dma.hbm_to_vmem [thread:$0]  (!%p1444_p10), %s1676_s2, 1024, %s162_s25, [#allocation6], %s1364_s30, %s1364_s30, %s1365_s5  }
  0x21   : > { %s1213_s8 = scalar_lea.vmem %s175_s28, 3072  ;;  %p1221_p2 = scmp.lt.s32.totalorder %s175_s28, %s175_s28 }
  0x22   : > { %p1214_p1 = scmp.ne.s32.totalorder %s175_s28, %s1213_s8  ;;  %p1222_p6 = scmp.lt.s32.totalorder %s1213_s8, %s1213_s8 }
  0x24   : > { %p1216_p12 = pnand %p1214_p1, %p1178_p11  ;;  %p1223_p3 = por %p1222_p6, %p1221_p2 }
  0x26   : > { %p1217_p13 = pneg %p1216_p12 }
  0x28   : > { %p1224_p0 = pnand %p1223_p3, %p1217_p13 }
  0x2a   : > { %1227 = shalt.err (!%p1224_p0)
}
  0x2b   : > { %1086 = dma.hbm_to_vmem [thread:$0]  (!%p1444_p10), %s1677_s3, 3072, %s175_s28, [#allocation9], %s1364_s30, %s1364_s30, %s1365_s5  }
  0x2c   : > { %s1467_s11 = sadd.s32 1, %s1360_s18   ;;  %s31_s12 = sadd.s32 1, %s1356_s17 }
  0x2d   : > { %s28_s13 = ssub.s32 %s1360_s18, %s1467_s11  ;;  %p38_p1 = scmp.ne.s32.totalorder %s1356_s17, %s1352_s16 }
  0x2e   : > { %p29_p2 = scmp.eq.s32.totalorder %s28_s13, 0  ;;  %p39_p6 = scmp.eq.s32.totalorder %s1360_s18, 0 }
  0x2f   : > { %p1687_p11 = scmp.eq.s32.totalorder %s1417_s19, 3  ;;  %p1100_p7 = scmp.lt.s32.totalorder %s1360_s18, 4 }
  0x30   : > { %s1483_s20 = scalar_select %p29_p2, %s1356_s17, %s31_s12  }
  0x31   : > { %p1477_p5 = por %p1687_p11, %p38_p1  ;;  %p40_p9 = por %p39_p6, %p38_p1 }
  0x32   : > { %s1486_s24 = sand.u32 1, %s1356_s17   ;;  %s893_s26 = sshll.u32 %s1360_s18, 6 }
  0x33   : > { %s1688_s14 = scalar_select %p1477_p5, 1, 0 }
  0x34   : > { %s892_s25 = sshll.u32 %s1486_s24, 2  ;;  %s1493_s29 = scalar_lea.hbm %s1674_s0, %s893_s26 }
  0x35   : > { %s192_s30 = scalar_lea.vmem [#allocation2], %s892_s25  ;;  %p1497_p10 = pnand %p1100_p7, %p40_p9 }
  0x36   : > { %s199_s5 = sshll.u32 %s192_s30, 4  ;;  %s206_s7 = sand.u32 1, %s1360_s18   ;;  %s1495_s5 = int_to_ptr.vmem [resolvable:$true] %s199_s5 }
  0x37   : > { %s894_s8 = sshll.u32 %s1486_s24, 1  ;;  %s189_s9 = scalar_lea.sflag [#allocation3], %s1486_s24 }
  0x38   : > { %s1228_s10 = scalar_lea.hbm %s1493_s29, 64  ;;  %p1230_p13 = pneg %p1497_p10 }
  0x39   : > { %p1229_p12 = scmp.ne.s32.totalorder %s1493_s29, %s1228_s10  ;;  %s1233_s25 = scalar_lea.hbm %s1674_s0, 256 }
  0x3a   : > { %p1234_p1 = scmp.lt.s32.totalorder %s1493_s29, %s1674_s0  ;;  %p1235_p2 = scmp.lt.s32.totalorder %s1233_s25, %s1228_s10 }
  0x3b   : > { %p1231_p3 = pnand %p1230_p13, %p1229_p12 }
  0x3c   : > { %p1236_p6 = por %p1235_p2, %p1234_p1 }
  0x3d   : > { %p1232_p0 = pneg %p1231_p3 }
  0x3f   : > { %p1237_p11 = pnand %p1236_p6, %p1232_p0 }
  0x41   : > { %1240 = shalt.err (!%p1237_p11)
}
  0x42   : > { %s1241_s28 = scalar_lea.vmem %s1495_s5, 64  ;;  %s1366_s30 = smov [#allocation2]  }
  0x43   : > { %p1242_p7 = scmp.ne.s32.totalorder %s1495_s5, %s1241_s28  ;;  %s1246_s12 = sshll.u32 %s1366_s30, 4  ;;  %s1247_s12 = int_to_ptr.vmem [resolvable:$false] %s1246_s12 }
  0x44   : > { %s1248_s13 = scalar_lea.vmem %s1247_s12, 128  ;;  %p1249_p3 = scmp.lt.s32.totalorder %s1495_s5, %s1247_s12 }
  0x45   : > { %p1244_p9 = pnand %p1242_p7, %p1230_p13  ;;  %p1250_p5 = scmp.lt.s32.totalorder %s1248_s13, %s1241_s28 }
  0x47   : > { %p1245_p12 = pneg %p1244_p9  ;;  %p1251_p4 = por %p1250_p5, %p1249_p3 }
  0x49   : > { %p1252_p1 = pnand %p1251_p4, %p1245_p12 }
  0x4b   : > { %1255 = shalt.err (!%p1252_p1)
}
  0x4c   : > { %1090 = dma.hbm_to_vmem [thread:$0]  (!%p1497_p10), %s1493_s29, 64, %s1495_s5, %s189_s9  }
  0x4d   : > { %s895_s10 = sshll.u32 %s1360_s18, 5  ;;  %s210_s28 = scalar_lea.vmem [#allocation5], %s894_s8 }
  0x4e   : > { %s1532_s27 = scalar_lea.hbm %s1675_s1, %s895_s10  ;;  %s217_s30 = sshll.u32 %s210_s28, 4  ;;  %s218_s30 = int_to_ptr.vmem [resolvable:$true] %s217_s30 }
  0x4f   : > { %s207_s12 = scalar_lea.sflag [#allocation6], %s206_s7  ;;  %s1256_s13 = scalar_lea.hbm %s1532_s27, 32 }
  0x50   : > { %p1257_p4 = scmp.ne.s32.totalorder %s1532_s27, %s1256_s13  ;;  %s1261_s9 = scalar_lea.hbm %s1675_s1, 128 }
  0x51   : > { %p1262_p2 = scmp.lt.s32.totalorder %s1532_s27, %s1675_s1  ;;  %p1263_p6 = scmp.lt.s32.totalorder %s1261_s9, %s1256_s13 }
  0x52   : > { %p1259_p5 = pnand %p1257_p4, %p1230_p13 }
  0x53   : > { %p1264_p11 = por %p1263_p6, %p1262_p2 }
  0x54   : > { %p1260_p0 = pneg %p1259_p5 }
  0x56   : > { %p1265_p7 = pnand %p1264_p11, %p1260_p0 }
  0x58   : > { %1268 = shalt.err (!%p1265_p7)
}
  0x59   : > { %s1269_s8 = scalar_lea.vmem %s218_s30, 32  ;;  %s1367_s7 = smov [#allocation5]  }
  0x5a   : > { %p1270_p9 = scmp.ne.s32.totalorder %s218_s30, %s1269_s8  ;;  %s1274_s25 = sshll.u32 %s1367_s7, 4  ;;  %s1275_s25 = int_to_ptr.vmem [resolvable:$false] %s1274_s25 }
  0x5b   : > { %s1276_s26 = scalar_lea.vmem %s1275_s25, 64  ;;  %p1277_p1 = scmp.lt.s32.totalorder %s218_s30, %s1275_s25 }
  0x5c   : > { %p1272_p12 = pnand %p1270_p9, %p1230_p13  ;;  %p1278_p4 = scmp.lt.s32.totalorder %s1276_s26, %s1269_s8 }
  0x5e   : > { %p1273_p3 = pneg %p1272_p12  ;;  %p1279_p5 = por %p1278_p4, %p1277_p1 }
  0x60   : > { %p1280_p8 = pnand %p1279_p5, %p1273_p3 }
  0x62   : > { %1283 = shalt.err (!%p1280_p8)
}
  0x63   : > { %1093 = dma.hbm_to_vmem [thread:$0]  (!%p1497_p10), %s1532_s27, 32, %s218_s30, %s207_s12  }
  0x64   : > { %p1690_p0 = scmp.ne.s32.totalorder %s1685_s23, 0 }
  0x65   : > { %s1559_s28 = sand.u32 (!%p1690_p0), 1, %s1352_s16   ;;  %p1691_p13 = scmp.ne.s32.totalorder (!%p1690_p0), %s1683_s21, 0 }
  0x66   : > { %226 = sbr.rel (%p1690_p0) target bundleno = 598 (0x256), region = 36  ;;  %s897_s13 = sshll.u32 (!%p1690_p0), %s1559_s28, 2 }
  0x67   : > { %s229_s29 = scalar_lea.sflag (!%p1690_p0), [#allocation3], %s1559_s28  ;;  %s1563_s5 = scalar_lea.vmem (!%p1690_p0), [#allocation2], %s897_s13 }
  0x6b   : > { %1327 = dma.done.wait (%p1691_p13), %s229_s29, 64  }
  0x6c   : > { %1329 = vsyncadd (%p1691_p13), %s229_s29, 4294967232  ;;  %s237_s23 = sand.u32 1, %s1417_s19   ;;  %s898_s6 = sshll.u32 %s1559_s28, 1 }
  0x6d   : > { %s238_s27 = scalar_lea.sflag [#allocation6], %s237_s23  ;;  %s1571_s30 = scalar_lea.vmem [#allocation5], %s898_s6 }
  0x6e   : > { %1331 = dma.done.wait (%p1691_p13), %s238_s27, 32  }
  0x6f   : > { %1333 = vsyncadd (%p1691_p13), %s238_s27, 4294967264  ;;  %p1692_p8 = scmp.eq.s32.totalorder %s1417_s19, 0 }
  0x71   : > { %1335 = dma.done.wait (%p1692_p8), [#allocation6], 1024   ;;  %p1693_p10 = pmov %p1692_p8 }
  0x72   : > { %p1694_p2 = pmov %p1692_p8 }
  0x73   : > { %1337 = vsyncadd (%p1693_p10), [#allocation6], 4294966272 }
  0x74   : > { %1339 = dma.done.wait (%p1694_p2), [#allocation9], 3072   ;;  %p1695_p6 = pmov %p1694_p2 }
  0x75   : > { %v1368_v0 = vmov 0.0   ;;  %vm1369_vm0 = vmmov 0   ;;  %v1142_v1 = vld [vmem:[#allocation7 + $0x38] sm:$0xff]   ;;  %v1144_v3 = vld [vmem:[#allocation7 + $0x30] sm:$0xff]   ;;  %v1146_v5 = vld [vmem:[#allocation7 + $0x28] sm:$0xff]   ;;  %vm703_vm1 = vcmask 195584  }
  0x76   : > { %1341 = vsyncadd (%p1695_p6), [#allocation9], 4294964224  ;;  %978 = vmatprep.subr.bf16.mxu0 %v1368_v0  ;;  %998 = vmatprep.subr.bf16.mxu1 %v1368_v0  ;;  %v1143_v2 = vld [vmem:[#allocation8 + $0x38] sm:$0xff]   ;;  %v1145_v4 = vld [vmem:[#allocation8 + $0x30] sm:$0xff]   ;;  %vm707_vm2 = vcmask 1043456   ;;  %s901_s21 = sshll.u32 %s1559_s28, 3 }
  0x77   : > { %994 = vmatprep.mubr.msk.bf16.mxu0 %vm1369_vm0, %v1368_v0  ;;  %1014 = vmatprep.mubr.msk.bf16.mxu1 %vm1369_vm0, %v1368_v0  ;;  %v1147_v6 = vld [vmem:[#allocation8 + $0x28] sm:$0xff]   ;;  %v1148_v7 = vld [vmem:[#allocation7 + $0x20] sm:$0xff]   ;;  %v1150_v9 = vld [vmem:[#allocation7 + $0x18] sm:$0xff]   ;;  %s936_s12 = sshll.u32 %s1417_s19, 7  ;;  %s278_s9 = scalar_lea.vmem [#allocation10], %s901_s21 }
  0x78   : > { %979 = vmatpush3.bf16.msra.mxu0 %v1142_v1  ;;  %999 = vmatpush3.bf16.msra.mxu1 %v1143_v2  ;;  %v1149_v8 = vld [vmem:[#allocation8 + $0x20] sm:$0xff]   ;;  %v1151_v10 = vld [vmem:[#allocation8 + $0x18] sm:$0xff]   ;;  %v1152_v11 = vld [vmem:[#allocation7 + $0x10] sm:$0xff]   ;;  %s775_s10 = sshll.u32 %s278_s9, 4  ;;  %s1638_s7 = scalar_lea.hbm %s1678_s4, %s936_s12  ;;  %s776_s10 = int_to_ptr.vmem [resolvable:$true] %s775_s10 }
  0x79   : > { %980 = vmatprep.subr.bf16.mxu0 %v1368_v0  ;;  %1000 = vmatprep.subr.bf16.mxu1 %v1368_v0  ;;  %v1153_v12 = vld [vmem:[#allocation8 + $0x10] sm:$0xff]   ;;  %v1154_v13 = vld [vmem:[#allocation7 + $0x8] sm:$0xff]   ;;  %v1156_v15 = vld [vmem:[#allocation7] sm:$0xff]   ;;  %s762_s25 = scalar_lea.sflag [#allocation4], %s1559_s28  ;;  %s1284_s26 = scalar_lea.vmem %s776_s10, 128 }
  0x7a   : > { %v1155_v14 = vld [vmem:[#allocation8 + $0x8] sm:$0xff]   ;;  %v1157_v16 = vld [vmem:[#allocation8] sm:$0xff]   ;;  %v280_v17 = vld [vmem:[%s1563_s5] sm:$0xf]  ;;  %p1285_p11 = scmp.ne.s32.totalorder %s776_s10, %s1284_s26  ;;  %p1696_p7 = scmp.ne.s32.totalorder %s1688_s14, 0 }
  0x7b   : > { %v1158_v18 = vld [vmem:[#allocation8 + $0x78] sm:$0xff]   ;;  %v1160_v20 = vld [vmem:[#allocation8 + $0x70] sm:$0xff]   ;;  %v1162_v22 = vld [vmem:[#allocation8 + $0x68] sm:$0xff]   ;;  %s1370_s19 = smov [#allocation10]  }
  0x7c   : > { %981 = vmatpush3.bf16.msra.mxu0 %v1144_v3  ;;  %1001 = vmatpush3.bf16.msra.mxu1 %v1145_v4  ;;  %v1159_v19 = vld [vmem:[#allocation8 + $0xb8] sm:$0xff]   ;;  %v1161_v21 = vld [vmem:[#allocation8 + $0xb0] sm:$0xff]   ;;  %v1163_v23 = vld [vmem:[#allocation8 + $0xa8] sm:$0xff]   ;;  %p1286_p9 = pnand %p1285_p11, %p1696_p7  ;;  %s1288_s13 = sshll.u32 %s1370_s19, 4  ;;  %s1289_s13 = int_to_ptr.vmem [resolvable:$false] %s1288_s13 }
  0x7d   : > { %982 = vmatprep.subr.bf16.mxu0 %v1368_v0  ;;  %1002 = vmatprep.subr.bf16.mxu1 %v1368_v0  ;;  %v1164_v24 = vld [vmem:[#allocation8 + $0x60] sm:$0xff]   ;;  %v1166_v26 = vld [vmem:[#allocation8 + $0x58] sm:$0xff]   ;;  %v1168_v28 = vld [vmem:[#allocation8 + $0x50] sm:$0xff]   ;;  %s1290_s29 = scalar_lea.vmem %s1289_s13, 256  ;;  %p1291_p3 = scmp.lt.s32.totalorder %s776_s10, %s1289_s13 }
  0x7e   : > { %v1165_v25 = vld [vmem:[#allocation8 + $0xa0] sm:$0xff]   ;;  %v1167_v27 = vld [vmem:[#allocation8 + $0x98] sm:$0xff]   ;;  %v1169_v29 = vld [vmem:[#allocation8 + $0x90] sm:$0xff]   ;;  %p1287_p12 = pneg %p1286_p9  ;;  %p1292_p1 = scmp.lt.s32.totalorder %s1290_s29, %s1284_s26 }
  0x7f   : > { %v1170_v30 = vld [vmem:[#allocation8 + $0x48] sm:$0xff]   ;;  %v1172_v32 = vld [vmem:[#allocation8 + $0x40] sm:$0xff]   ;;  %v701_v34 = vld [vmem:[%s1571_s30] sm:$0x3] }
  0x80   : > { %983 = vmatpush3.bf16.msra.mxu0 %v1146_v5  ;;  %1003 = vmatpush3.bf16.msra.mxu1 %v1147_v6  ;;  %v1171_v31 = vld [vmem:[#allocation8 + $0x88] sm:$0xff]   ;;  %v1173_v33 = vld [vmem:[#allocation8 + $0x80] sm:$0xff]   ;;  %v702_v35 = vunpack.c.l.s8.bf16 %v701_v34  ;;  %p1293_p4 = por %p1292_p1, %p1291_p3 }
  0x81   : > { %984 = vmatprep.subr.bf16.mxu0 %v1368_v0  ;;  %1004 = vmatprep.subr.bf16.mxu1 %v1368_v0 }
  0x82   : > { %v751_v36 = vunpack.c.l.bf16 %v702_v35  ;;  %p1294_p5 = pnand %p1293_p4, %p1287_p12 }
  0x84   : > { %985 = vmatpush3.bf16.msra.mxu0 %v1148_v7  ;;  %1005 = vmatpush3.bf16.msra.mxu1 %v1149_v8  ;;  %v752_v37 = vsel %vm703_vm1, %v751_v36, 0.0 }
  0x85   : > { %986 = vmatprep.subr.bf16.mxu0 %v1368_v0  ;;  %1006 = vmatprep.subr.bf16.mxu1 %v1368_v0 }
  0x86   : > { %753 = vadd.xlane.f32.xlu0 %v752_v37 }
  0x88   : > { %987 = vmatpush3.bf16.msra.mxu0 %v1150_v9  ;;  %1007 = vmatpush3.bf16.msra.mxu1 %v1151_v10 }
  0x89   : > { %988 = vmatprep.subr.bf16.mxu0 %v1368_v0  ;;  %1008 = vmatprep.subr.bf16.mxu1 %v1368_v0 }
  0x8c   : > { %989 = vmatpush3.bf16.msra.mxu0 %v1152_v11  ;;  %1009 = vmatpush3.bf16.msra.mxu1 %v1153_v12 }
  0x8d   : > { %990 = vmatprep.subr.bf16.mxu0 %v1368_v0  ;;  %1010 = vmatprep.subr.bf16.mxu1 %v1368_v0 }
  0x90   : > { %991 = vmatpush3.bf16.msra.mxu0 %v1154_v13  ;;  %1011 = vmatpush3.bf16.msra.mxu1 %v1155_v14 }
  0x91   : > { %992 = vmatprep.subr.bf16.mxu0 %v1368_v0  ;;  %1012 = vmatprep.subr.bf16.mxu1 %v1368_v0 }
  0x94   : > { %993 = vmatpush3.bf16.msra.mxu0 %v1156_v15  ;;  %1013 = vmatpush3.bf16.msra.mxu1 %v1157_v16 }
  0x95   : > { %1018 = vmatprep.subr.bf16.mxu0 %v1368_v0  ;;  %1038 = vmatprep.subr.bf16.mxu1 %v1368_v0 }
  0x97   : > { %995 = vmatmul.mubr.bf16.vlgmr.msra.gmra.mxu0 %v280_v17  ;;  %1015 = vmatmul.mubr.bf16.vlgmr.msra.gmra.mxu1 %v280_v17 }
  0x98   : > { %1019 = vmatpush3.bf16.msra.mxu0 %v1158_v18  ;;  %1039 = vmatpush3.bf16.msra.mxu1 %v1159_v19 }
  0x99   : > { %1020 = vmatprep.subr.bf16.mxu0 %v1368_v0  ;;  %1040 = vmatprep.subr.bf16.mxu1 %v1368_v0 }
  0x9a   : > { %1034 = vmatprep.mubr.msk.bf16.mxu0 %vm1369_vm0, %v1368_v0  ;;  %1054 = vmatprep.mubr.msk.bf16.mxu1 %vm1369_vm0, %v1368_v0 }
  0x9c   : > { %1021 = vmatpush3.bf16.msra.mxu0 %v1160_v20  ;;  %1041 = vmatpush3.bf16.msra.mxu1 %v1161_v21 }
  0x9d   : > { %1022 = vmatprep.subr.bf16.mxu0 %v1368_v0  ;;  %1042 = vmatprep.subr.bf16.mxu1 %v1368_v0 }
  0xa0   : > { %1023 = vmatpush3.bf16.msra.mxu0 %v1162_v22  ;;  %1043 = vmatpush3.bf16.msra.mxu1 %v1163_v23 }
  0xa1   : > { %1024 = vmatprep.subr.bf16.mxu0 %v1368_v0  ;;  %1044 = vmatprep.subr.bf16.mxu1 %v1368_v0 }
  0xa4   : > { %1025 = vmatpush3.bf16.msra.mxu0 %v1164_v24  ;;  %1045 = vmatpush3.bf16.msra.mxu1 %v1165_v25 }
  0xa5   : > { %1026 = vmatprep.subr.bf16.mxu0 %v1368_v0  ;;  %1046 = vmatprep.subr.bf16.mxu1 %v1368_v0 }
  0xa8   : > { %1027 = vmatpush3.bf16.msra.mxu0 %v1166_v26  ;;  %1047 = vmatpush3.bf16.msra.mxu1 %v1167_v27 }
  0xa9   : > { %1028 = vmatprep.subr.bf16.mxu0 %v1368_v0  ;;  %1048 = vmatprep.subr.bf16.mxu1 %v1368_v0 }
  0xac   : > { %1029 = vmatpush3.bf16.msra.mxu0 %v1168_v28  ;;  %1049 = vmatpush3.bf16.msra.mxu1 %v1169_v29 }
  0xad   : > { %1030 = vmatprep.subr.bf16.mxu0 %v1368_v0  ;;  %1050 = vmatprep.subr.bf16.mxu1 %v1368_v0 }
  0xb0   : > { %1031 = vmatpush3.bf16.msra.mxu0 %v1170_v30  ;;  %1051 = vmatpush3.bf16.msra.mxu1 %v1171_v31 }
  0xb1   : > { %1032 = vmatprep.subr.bf16.mxu0 %v1368_v0  ;;  %1052 = vmatprep.subr.bf16.mxu1 %v1368_v0 }
  0xb4   : > { %1033 = vmatpush3.bf16.msra.mxu0 %v1172_v32  ;;  %1053 = vmatpush3.bf16.msra.mxu1 %v1173_v33 }
  0xb5   : > { %1058 = vmatprep.subr.bf16.mxu0 %v1368_v0 }
  0xb7   : > { %1035 = vmatmul.mubr.bf16.vlgmr.msra.gmra.mxu0 %v280_v17  ;;  %1055 = vmatmul.mubr.bf16.vlgmr.msra.gmra.mxu1 %v280_v17 }
  0xb8   : > { %1062 = vmatprep.mubr.msk.bf16.mxu0 %vm1369_vm0, %v1368_v0 }
 0x10f   : > { %v754_v57 = vpop.xlane.xlu0 %753 }
 0x110   : > { %v755_v58 = vmax.f32 %v754_v57, 1.0 }
 0x112   : > { %1174 = vrcp.f32 %v755_v58 }
 0x11f   : > { %v1175_v59 = vpop.eup %1174 }
 0x157   : > { %v379_v38 = vpop.f32.mrf.mxu0  ;;  %v483_v39 = vpop.f32.mrf.mxu1 }
 0x159   : > { %v996_v40 = vpop.f32.mrf.mxu0  ;;  %v1016_v41 = vpop.f32.mrf.mxu1 }
 0x15b   : > { %v382_v42 = vpop.f32.mrf.mxu0  ;;  %v486_v43 = vpop.f32.mrf.mxu1 }
 0x15d   : > { %v997_v44 = vpop.f32.mrf.mxu0  ;;  %v1017_v45 = vpop.f32.mrf.mxu1 }
 0x177   : > { %v588_v46 = vpop.f32.mrf.mxu0  ;;  %v693_v47 = vpop.f32.mrf.mxu1 }
 0x178   : > { %v700_v48 = vpack.c.bf16 %v693_v47, %v693_v47  ;;  %v699_v55 = vpack.c.bf16 %v588_v46, %v483_v39 }
 0x179   : > { %v1036_v49 = vpop.f32.mrf.mxu0  ;;  %v1056_v50 = vpop.f32.mrf.mxu1 }
 0x17a   : > { %v709_v51 = vsel %vm707_vm2, %v700_v48, 0 }
 0x17b   : > { %v591_v52 = vpop.f32.mrf.mxu0  ;;  %v696_v53 = vpop.f32.mrf.mxu1  ;;  %1059 = vmatpush3.bf16.msra.mxu0 %v709_v51 }
 0x17c   : > { %1060 = vmatprep.subr.bf16.mxu0 %v1368_v0 }
 0x17d   : > { %v1037_v54 = vpop.f32.mrf.mxu0  ;;  %v1057_v56 = vpop.f32.mrf.mxu1 }
 0x17f   : > { %1061 = vmatpush3.bf16.msra.mxu0 %v699_v55 }
 0x182   : > { %1063 = vmatmul.mubr.msk.bf16.vlgmr.msra.gmra.mxu0 %vm703_vm1, %v702_v35 }
 0x242   : > { %v745_v60 = vpop.f32.mrf.mxu0 }
 0x243   : > { %v757_v61 = vmul.f32 %v1175_v59, %v745_v60 }
 0x244   : > { %v1064_v62 = vpop.f32.mrf.mxu0 }
 0x245   : > { %v758_v63 = vadd.f32 %v757_v61, %v379_v38 }
 0x246   : > { %v748_v0 = vpop.f32.mrf.mxu0 }
 0x247   : > { %v759_v1 = vmax.f32 %v758_v63, 0.0 }
 0x248   : > { %v1065_v2 = vpop.f32.mrf.mxu0 }
 0x249   : > { %760 = vst [vmem:[%s278_s9] sm:$0xff] %v759_v1 }
 0x24a   : > { %1297 = shalt.err (!%p1294_p5)
}
 0x24b   : > { %s1298_s5 = scalar_lea.hbm %s1638_s7, 128  ;;  %s1302_s6 = scalar_lea.hbm %s1678_s4, 512 }
 0x24c   : > { %p1299_p0 = scmp.ne.s32.totalorder %s1638_s7, %s1298_s5  ;;  %p1303_p10 = scmp.lt.s32.totalorder %s1638_s7, %s1678_s4 }
 0x24d   : > { %p1304_p2 = scmp.lt.s32.totalorder %s1302_s6, %s1298_s5 }
 0x24e   : > { %p1300_p13 = pnand %p1299_p0, %p1696_p7 }
 0x24f   : > { %p1305_p6 = por %p1304_p2, %p1303_p10 }
 0x250   : > { %p1301_p8 = pneg %p1300_p13 }
 0x252   : > { %p1306_p11 = pnand %p1305_p6, %p1301_p8 }
 0x254   : > { %1309 = shalt.err (!%p1306_p11)
}
 0x255   : > { %1078 = dma.vmem_to_hbm [thread:$0]  (%p1696_p7), %s776_s10, 128, %s1638_s7, %s762_s25  }
 0x256 PF: > { %p1103_p9 = scmp.ge.s32.totalorder %s1360_s18, 2  ;;  %s787_s21 = sand.u32 1, %s1348_s15  }
 0x257   : > { %p1697_p12 = scmp.ne.s32.totalorder %s1684_s22, 0  ;;  %s788_s12 = scalar_lea.sflag [#allocation4], %s787_s21 }
 0x259   : > { %p1095_p3 = pnand %p1103_p9, %p1697_p12 }
 0x25b   : > { %p1096_p1 = pneg %p1095_p3 }
 0x25d   : > { %1343 = dma.done.wait (%p1096_p1), %s788_s12, 128  }
 0x25e   : > { %1345 = vsyncadd (%p1096_p1), %s788_s12, 4294967168  ;;  %p21_p4 = scmp.ge.s32.totalorder %s1467_s11, 6   ;;  %s1698_s15 = smov %s1352_s16 }
 0x25f   : > { %s1699_s16 = smov %s1356_s17  ;;  %s1700_s17 = smov %s1483_s20 }
 0x260   : > { %s1701_s18 = smov %s1467_s11  ;;  %23 = sbr.rel (!%p21_p4) target bundleno = 8 (0x8), region = 104 }
 0x265   :  { %793 = vsyncpa [#allocation3], 1 }
 0x266   :  { %795 = vsyncpa [#allocation3 + $0x1], 1 }
 0x267   :  { %796 = vsyncpa [#allocation6], 1 }
 0x268   :  { %798 = vsyncpa [#allocation6 + $0x1], 1 }
 0x269   :  { %799 = vsyncpa [#allocation9], 1 }
 0x26a   :  { %800 = vsyncpa [#allocation4], 1 }
 0x26b   :  { %802 = vsyncpa [#allocation4 + $0x1], 1 }

</bundles_post_ra>
